<compile_context>
chip_gen: v5e
topology: v5e:2x2
jax: 0.10.0
libtpu: 0.0.40
codegen_flags: <defaults>
</compile_context>

<pallas_src>
import jax
import jax.numpy as jnp
from jax.experimental import pallas as pl
from jax.experimental.pallas import tpu as pltpu

# ---------------- model hyper-parameters (small, synthetic) ----------------
BATCH = 2
SEQ = 8
VOCAB_SIZE = 64
EMBED_SIZE = 32
FEATS = ["upos", "lemma"]
N_FEATS = [16, 24]
FEAT_SIZE = 16                                        # feats_size int -> broadcast
IN_FEATURES = EMBED_SIZE + FEAT_SIZE * len(FEATS)     # 64
OUT_FEATURES = EMBED_SIZE                             # 32

# fused-gather geometry
LANE = 128
K_TOTAL = VOCAB_SIZE + sum(N_FEATS)                   # 104 rows (word + feat rows)
BIAS_ROW = K_TOTAL                                    # 104: always-hot bias row
K_PAD = -(-(K_TOTAL + 1) // LANE) * LANE              # 128 (MXU-friendly K)


# ------------------------------- kernel ------------------------------------
def encoder_kernel(ids_ref, table_ref, out_ref):
    """Fused multi-hot bf16 matmul == 3 embedding gathers + folded FFN + bias."""
    tn = ids_ref.shape[0]
    k = table_ref.shape[0]

    packed = ids_ref[...]                                    # (TN, 1) int32, 3x7-bit ids
    id_w = packed & 0x7F
    id_f0 = (packed >> 8) & 0x7F
    id_f1 = (packed >> 16) & 0x7F

    iota = jax.lax.broadcasted_iota(jnp.int32, (tn, k), 1)   # (TN, K_PAD)
    # id ranges are disjoint (word: [0,64), f0: [64,80), f1: [80,104), bias: 104),
    # so the OR of the hits is an exact multi-hot; 0/1 are exact in bf16.
    multi_hot = ((iota == id_w) | (iota == id_f0) | (iota == id_f1) |
                 (iota == BIAS_ROW)).astype(jnp.bfloat16)

    # single MXU push: K = 128, bf16 operands, f32 accumulation, 32-wide output
    y = jnp.dot(multi_hot, table_ref[...], preferred_element_type=jnp.float32)

    # LeakyReLU(0.1) activation of the FFN.
    out_ref[...] = jnp.where(y > 0, y, 0.1 * y).astype(out_ref.dtype)


# --------------------------- parameter folding ------------------------------
def fold_params(params):
    """Fold embedding tables + bias into one (K_PAD, OUT_FEATURES) bf16 table."""
    e, f0 = EMBED_SIZE, FEAT_SIZE
    w = params["ffn_w"]                                      # (IN_FEATURES, OUT)
    folded = jnp.concatenate([
        params["emb_words"] @ w[0:e, :],                     # (V,  OUT)
        params["emb_f0"] @ w[e:e + f0, :],                   # (F0, OUT)
        params["emb_f1"] @ w[e + f0:, :],                    # (F1, OUT)
    ], axis=0)                                               # (K_TOTAL, OUT)
    table = jnp.zeros((K_PAD, OUT_FEATURES), jnp.float32)
    table = table.at[:K_TOTAL, :].set(folded)
    table = table.at[BIAS_ROW, :].set(params["ffn_b"][0])    # bias as always-hot row
    return table.astype(jnp.bfloat16)


# ------------------------------ wrapper -------------------------------------
def encoder_forward(words, feats, params, *, tn=None):
    """words: (B, S) int32, feats: list of (B, S) int32 -> (B, S, EMBED_SIZE) f32."""
    b, s = words.shape
    n = b * s

    # Pack the 3 id streams (offsets pre-added, each < 128) into one int32/token.
    ids = (words.reshape(n).astype(jnp.int32)
           | ((feats[0].reshape(n).astype(jnp.int32) + VOCAB_SIZE) << 8)
           | ((feats[1].reshape(n).astype(jnp.int32) + VOCAB_SIZE + N_FEATS[0]) << 16)
           ).reshape(n, 1)

    # Token-tile size: as large as useful (mem-bound -> fewer grid-step overheads),
    # but keep >=2 grid steps when possible so v7x's 2 TensorCores both get work.
    if tn is None:
        tn = max(8, min(512, pl.next_power_of_2(max(n // 2, 1))))
    n_pad = -(-n // tn) * tn
    ids = jnp.pad(ids, ((0, n_pad - n), (0, 0)))             # padded rows sliced off below

    table = fold_params(params)
    grid = (n_pad // tn,)

    cost = pl.CostEstimate(
        flops=2 * n_pad * K_PAD * OUT_FEATURES,
        transcendentals=0,
        bytes_accessed=n_pad * 4                              # packed ids
        + n_pad * OUT_FEATURES * 4                            # f32 output
        + K_PAD * OUT_FEATURES * 2,                           # bf16 table (resident)
    )

    out = pl.pallas_call(
        encoder_kernel,
        out_shape=jax.ShapeDtypeStruct((n_pad, OUT_FEATURES), jnp.float32),
        grid_spec=pltpu.PrefetchScalarGridSpec(
            num_scalar_prefetch=0,
            grid=grid,
            in_specs=[
                pl.BlockSpec((tn, 1), lambda i: (i, 0)),                # packed ids
                pl.BlockSpec((K_PAD, OUT_FEATURES), lambda i: (0, 0)),  # folded table (resident)
            ],
            out_specs=pl.BlockSpec((tn, OUT_FEATURES), lambda i: (i, 0)),
        ),
        compiler_params=pltpu.CompilerParams(
            dimension_semantics=("parallel",)),                         # v7x: shard over 2 TCs
        cost_estimate=cost,
    )(ids, table)

    return out[:n].reshape(b, s, OUT_FEATURES)


# --------------------------- pure-JAX reference ------------------------------
def encoder_reference(words, feats, params):
    e = params["emb_words"][words]                           # (B, S, E)
    ef0 = params["emb_f0"][feats[0]]                         # (B, S, F0)
    ef1 = params["emb_f1"][feats[1]]                         # (B, S, F1)
    x = jnp.concatenate([e, ef0, ef1], axis=-1)              # (B, S, 64)
    y = x @ params["ffn_w"] + params["ffn_b"][0]             # (B, S, 32)
    return jnp.where(y > 0, y, 0.1 * y)


# ------------------------------- main ----------------------------------------
if __name__ == "__main__":
    # deterministic parameters
    pkey = jax.random.PRNGKey(42)
    k1, k2, k3, k4, k5 = jax.random.split(pkey, 5)
    params = {
        "emb_words": jax.random.normal(k1, (VOCAB_SIZE, EMBED_SIZE), jnp.float32) * 0.1,
        "emb_f0": jax.random.normal(k2, (N_FEATS[0], FEAT_SIZE), jnp.float32) * 0.1,
        "emb_f1": jax.random.normal(k3, (N_FEATS[1], FEAT_SIZE), jnp.float32) * 0.1,
        # stored as (in_features, out_features) == PyTorch Linear weight.T
        "ffn_w": jax.random.normal(k4, (IN_FEATURES, OUT_FEATURES), jnp.float32) * 0.1,
        "ffn_b": jax.random.normal(k5, (1, OUT_FEATURES), jnp.float32) * 0.1,
    }

    # deterministic inputs
    ikey = jax.random.PRNGKey(0)
    kw, kf0, kf1 = jax.random.split(ikey, 3)
    words = jax.random.randint(kw, (BATCH, SEQ), 0, VOCAB_SIZE, jnp.int32)
    feats = [
        jax.random.randint(kf0, (BATCH, SEQ), 0, N_FEATS[0], jnp.int32),
        jax.random.randint(kf1, (BATCH, SEQ), 0, N_FEATS[1], jnp.int32),
    ]

    out = encoder_forward(words, feats, params)
    out = jax.block_until_ready(out)

    ref = encoder_reference(words, feats, params)
    assert out.shape == (BATCH, SEQ, EMBED_SIZE), out.shape
    # tolerance loosened slightly vs the pure-f32 reference because the folded
    # table (including the bias row) is stored in bf16; the one-hot values
    # themselves are exact in bf16.
    assert jnp.allclose(out, ref, atol=5e-3, rtol=5e-3), "mismatch vs reference"

    print("KERNEL_OK")
</pallas_src>

<mosaic_0001>
module attributes {stable_mosaic.version = 11 : i64} {
  func.func @encoder_kernel(%arg0: i32, %arg1: memref<8x1xi32, #tpu.memory_space<vmem>>, %arg2: memref<128x32xbf16, #tpu.memory_space<vmem>>, %arg3: memref<8x32xf32, #tpu.memory_space<vmem>>) attributes {dimension_semantics = [#tpu.dimension_semantics<parallel>], iteration_bounds = array<i64: 2>, scalar_prefetch = 0 : i64, scratch_operands = 0 : i64, tpu.core_type = #tpu.core_type<tc>, window_params = [{transform_indices = @transform_0, window_bounds = array<i64: 8, 1>}, {pipeline_mode = #tpu.pipeline_mode<synchronous>, transform_indices = @transform_1, window_bounds = array<i64: 128, 32>}, {transform_indices = @transform_2, window_bounds = array<i64: 8, 32>}]} {
    %c0 = arith.constant 0 : index
    %c0_0 = arith.constant 0 : index
    %0 = vector.load %arg1[%c0, %c0_0] : memref<8x1xi32, #tpu.memory_space<vmem>>, vector<8x1xi32>
    %c127_i32 = arith.constant 127 : i32
    %1 = vector.broadcast %c127_i32 : i32 to vector<8x1xi32>
    %2 = arith.andi %0, %1 : vector<8x1xi32>
    %c8_i32 = arith.constant 8 : i32
    %3 = vector.broadcast %c8_i32 : i32 to vector<8x1xi32>
    %4 = arith.shrsi %0, %3 : vector<8x1xi32>
    %c127_i32_1 = arith.constant 127 : i32
    %5 = vector.broadcast %c127_i32_1 : i32 to vector<8x1xi32>
    %6 = arith.andi %4, %5 : vector<8x1xi32>
    %c16_i32 = arith.constant 16 : i32
    %7 = vector.broadcast %c16_i32 : i32 to vector<8x1xi32>
    %8 = arith.shrsi %0, %7 : vector<8x1xi32>
    %c127_i32_2 = arith.constant 127 : i32
    %9 = vector.broadcast %c127_i32_2 : i32 to vector<8x1xi32>
    %10 = arith.andi %8, %9 : vector<8x1xi32>
    %11 = tpu.iota {dimensions = array<i32: 1>} : vector<8x128xi32>
    %12 = vector.broadcast %2 : vector<8x1xi32> to vector<8x128xi32>
    %13 = arith.cmpi eq, %11, %12 : vector<8x128xi32>
    %14 = vector.broadcast %6 : vector<8x1xi32> to vector<8x128xi32>
    %15 = arith.cmpi eq, %11, %14 : vector<8x128xi32>
    %16 = arith.ori %13, %15 : vector<8x128xi1>
    %17 = vector.broadcast %10 : vector<8x1xi32> to vector<8x128xi32>
    %18 = arith.cmpi eq, %11, %17 : vector<8x128xi32>
    %19 = arith.ori %16, %18 : vector<8x128xi1>
    %c104_i32 = arith.constant 104 : i32
    %20 = vector.broadcast %c104_i32 : i32 to vector<8x128xi32>
    %21 = arith.cmpi eq, %11, %20 : vector<8x128xi32>
    %22 = arith.ori %19, %21 : vector<8x128xi1>
    %23 = arith.extui %22 : vector<8x128xi1> to vector<8x128xi32>
    %24 = arith.sitofp %23 : vector<8x128xi32> to vector<8x128xf32>
    %25 = arith.truncf %24 : vector<8x128xf32> to vector<8x128xbf16>
    %c0_3 = arith.constant 0 : index
    %c0_4 = arith.constant 0 : index
    %26 = vector.load %arg2[%c0_3, %c0_4] : memref<128x32xbf16, #tpu.memory_space<vmem>>, vector<128x32xbf16>
    %cst = arith.constant dense<0.000000e+00> : vector<8x32xf32>
    %27 = tpu.matmul %25, %26, %cst {dimension_numbers = #tpu.dot_dimension_numbers<[1], [0], [0], [1], [0, 0, 1, 1], [], []>} : vector<8x128xbf16>, vector<128x32xbf16>, vector<8x32xf32> -> vector<8x32xf32>
    %cst_5 = arith.constant 0.000000e+00 : f32
    %28 = vector.broadcast %cst_5 : f32 to vector<8x32xf32>
    %29 = arith.cmpf ogt, %27, %28 : vector<8x32xf32>
    %cst_6 = arith.constant 1.000000e-01 : f32
    %30 = vector.broadcast %cst_6 : f32 to vector<8x32xf32>
    %31 = arith.mulf %30, %27 : vector<8x32xf32>
    %32 = arith.select %29, %27, %31 : vector<8x32xi1>, vector<8x32xf32>
    %c0_7 = arith.constant 0 : index
    %c0_8 = arith.constant 0 : index
    %33 = vector.load %arg3[%c0_7, %c0_8] : memref<8x32xf32, #tpu.memory_space<vmem>>, vector<8x32xf32>
    tpu.vector_store %arg3[%c0_7, %c0_8], %32 {strides = array<i32>} : memref<8x32xf32, #tpu.memory_space<vmem>>, vector<8x32xf32>,
    return
  }
  func.func @transform_0(%arg0: i32) -> (i32, i32) {
    %c0_i32 = arith.constant 0 : i32
    %c0_i32_0 = arith.constant 0 : i32
    return %arg0, %c0_i32 : i32, i32
  }
  func.func @transform_1(%arg0: i32) -> (i32, i32) {
    %c0_i32 = arith.constant 0 : i32
    %c0_i32_0 = arith.constant 0 : i32
    %c0_i32_1 = arith.constant 0 : i32
    return %c0_i32, %c0_i32_0 : i32, i32
  }
  func.func @transform_2(%arg0: i32) -> (i32, i32) {
    %c0_i32 = arith.constant 0 : i32
    %c0_i32_0 = arith.constant 0 : i32
    return %arg0, %c0_i32 : i32, i32
  }
}

</mosaic_0001>

<bundles_post_ra>
// kernel: tpu_custom_call.1
= control target key start
LH: loop header
LB: loop body
LE: loop exit
PB: predicated region body
PF: predicated region fallthrough
CT: control target
= control target key end

     0   :  { %7 = vsyncpa [#allocation3], 0  ;;  %s609_s0 = inlined_call_operand.vmem [shape: s32[16,1], index: 0, kind: input, shape index: {}]   ;;  %s610_s1 = inlined_call_operand.vmem [shape: bf16[128,32], index: 1, kind: input, shape index: {}]   ;;  %s611_s2 = inlined_call_operand.hbm [shape: f32[16,32], index: 2, kind: output, shape index: {}]  }
   0x1   :  { %9 = vsyncpa [#allocation3 + $0x1], 0  ;;  %s500_s9 = smov 0   ;;  %s502_s10 = smov 0  }
   0x2   :  { %s504_s11 = smov 0   ;;  %s506_s12 = smov 0  }
   0x3 LB: > { %s521_s13 = sadd.s32 4294967295, %s481_s12   ;;  %s323_s14 = sadd.s32 4294967294, %s481_s12   ;;  %s481_s12 = sphi %s506_s12, %s617_s12   ;;  %s477_s11 = sphi %s504_s11, %s616_s11   ;;  %s473_s10 = sphi %s502_s10, %s615_s10   ;;  %s469_s9 = sphi %s500_s9, %s614_s9  }
   0x4   : > { %s525_s15 = sadd.s32 1, %s481_s12   ;;  %s69_s16 = sadd.s32 1, %s477_s11 }
   0x5   : > { %s66_s17 = ssub.s32 %s481_s12, %s525_s15  ;;  %p79_p0 = scmp.ne.s32.totalorder %s477_s11, %s473_s10 }
   0x6   : > { %p67_p1 = scmp.eq.s32.totalorder %s66_s17, 0  ;;  %p80_p2 = scmp.eq.s32.totalorder %s521_s13, 1 }
   0x7   : > { %p85_p3 = scmp.ne.s32.totalorder %s473_s10, %s469_s9  ;;  %p86_p4 = scmp.eq.s32.totalorder %s323_s14, 1 }
   0x8   : > { %s536_s18 = scalar_select %p67_p1, %s477_s11, %s69_s16  }
   0x9   : > { %p538_p5 = por %p80_p2, %p79_p0  ;;  %p542_p6 = por %p86_p4, %p85_p3 }
   0xa   : > { %p326_p7 = scmp.ge.s32.totalorder %s481_s12, 1  ;;  %p114_p8 = scmp.lt.s32.totalorder %s481_s12, 3 }
   0xc   : > { %p115_p9 = pnand %p326_p7, %p114_p8 }
   0xd   : > { %p135_p10 = scmp.lt.s32.totalorder (!%p115_p9), %s521_s13, 1  ;;  %s365_s24 = sshll.u32 (!%p115_p9), %s521_s13, 3 }
   0xe   : > { %118 = sbr.rel (%p115_p9) target bundleno = 288 (0x120), region = 28  ;;  %s259_s28 = scalar_lea.hbm (!%p115_p9), %s611_s2, %s365_s24 }
   0xf   : > { %s263_s3 = sshll.u32 (!%p115_p9), %s259_s28, 4  ;;  %s439_s8 = scalar_lea.hbm (!%p115_p9), %s611_s2, 16  ;;  %s264_s3 = int_to_ptr.hbm [resolvable:$true] %s263_s3 }
  0x10   : > { %s433_s5 = sshra.s32 (!%p115_p9), %s264_s3, 4  ;;  %s434_s5 = int_to_ptr.hbm [resolvable:$true] %s433_s5 }
  0x11   : > { %p440_p0 = scmp.lt.s32.totalorder (!%p115_p9), %s434_s5, %s611_s2 }
  0x13   : > { %v375_v0 = vld [vmem:[%s610_s1 + $0x38] sm:$0xff]  ;;  %v483_v1 = vmov 0   ;;  %s136_s23 = scalar_select %p135_p10, %s521_s13, 1  ;;  %v374_v2 = vld [vmem:[%s610_s1 + $0x30] sm:$0xff]  ;;  %v373_v4 = vld [vmem:[%s610_s1 + $0x28] sm:$0xff]  ;;  %v145_v16 = vlaneseq  ;;  %vm246_vm9 = vcmask 261120  }
  0x14   : > { %417 = vset.pattern.permute.xlu0 %v483_v1  ;;  %418 = vset.pattern.permute.xlu1 %v483_v1  ;;  %v372_v9 = vld [vmem:[%s610_s1 + $0x20] sm:$0xff]  ;;  %v371_v11 = vld [vmem:[%s610_s1 + $0x18] sm:$0xff]  ;;  %v370_v12 = vld [vmem:[%s610_s1 + $0x10] sm:$0xff]  ;;  %v484_v20 = vmov 1.0|1.0   ;;  %s435_s13 = scalar_lea.hbm %s434_s5, 8 }
  0x15   : > { %230 = vmatpush.bf16.msra.mxu0 %v375_v0  ;;  %s328_s26 = sshll.u32 %s136_s23, 3  ;;  %v369_v13 = vld [vmem:[%s610_s1 + $0x8] sm:$0xff]  ;;  %v368_v14 = vld [vmem:[%s610_s1] sm:$0xff]  ;;  %v146_v17 = vand.u32 127, %v145_v16  ;;  %s132_s23 = sand.u32 1, %s473_s10  }
  0x16   : > { %s138_s29 = scalar_lea.vmem %s609_s0, %s328_s26  ;;  %s327_s25 = sshll.u32 %s132_s23, 3 }
  0x17   : > { %v139_v3 = vld [vmem:[%s138_s29] sm:$0xff]  ;;  %vm161_vm3 = vcmp.eq.s32.totalorder %v146_v17, 104  ;;  %s134_s29 = scalar_lea.vmem [#allocation2], %s327_s25  ;;  %s249_s4 = scalar_lea.sflag [#allocation3], %s132_s23 }
  0x18   : > { %v140_v5 = vand.u32 127, %v139_v3  ;;  %v143_v6 = vshra.s32 %v139_v3, 16  ;;  %v141_v7 = vshra.s32 %v139_v3, 8  ;;  %s261_s30 = sshll.u32 %s134_s29, 4  ;;  %p436_p11 = scmp.ne.s32.totalorder %s434_s5, %s435_s13  ;;  %s262_s30 = int_to_ptr.vmem [resolvable:$true] %s261_s30 }
  0x19   : > { %231 = vmatpush.bf16.msra.mxu0 %v374_v2  ;;  %p441_p1 = scmp.lt.s32.totalorder %s439_s8, %s435_s13 }
  0x1a   : > { %148 = vperm.xlu0 %417, %v140_v5   ;;  %v144_v8 = vand.u32 127, %v143_v6  ;;  %v142_v10 = vand.u32 127, %v141_v7  ;;  %p437_p12 = pnand %p436_p11, %p538_p5 }
  0x1b   : > { %p442_p2 = por %p441_p1, %p440_p0 }
  0x1c   : > { %157 = vperm.xlu1 %418, %v144_v8   ;;  %p438_p13 = pneg %p437_p12 }
  0x1d   : > { %232 = vmatpush.bf16.msra.mxu0 %v373_v4 }
  0x1e   : > { %p443_p3 = pnand %p442_p2, %p438_p13 }
  0x21   : > { %233 = vmatpush.bf16.msra.mxu0 %v372_v9 }
  0x22   : > { %152 = vperm.xlu0 %417, %v142_v10  }
  0x25   : > { %234 = vmatpush.bf16.msra.mxu0 %v371_v11 }
  0x29   : > { %235 = vmatpush.bf16.msra.mxu0 %v370_v12 }
  0x2d   : > { %236 = vmatpush.bf16.msra.mxu0 %v369_v13 }
  0x31   : > { %237 = vmatpush.bf16.msra.mxu0 %v368_v14 }
  0x8c   : > { %v149_v15 = vpop.permute.xlu0 %148 }
  0x8d   : > { %vm150_vm1 = vcmp.eq.s32.totalorder %v146_v17, %v149_v15 }
  0x8e   : > { %v158_v18 = vpop.permute.xlu1 %157 }
  0x8f   : > { %vm159_vm0 = vcmp.eq.s32.totalorder %v146_v17, %v158_v18 }
  0x94   : > { %v153_v19 = vpop.permute.xlu0 %152 }
  0x95   : > { %vm154_vm2 = vcmp.eq.s32.totalorder %v146_v17, %v153_v19 }
  0x96   : > { %vm155_vm4 = vmor %vm150_vm1, %vm154_vm2 }
  0x97   : > { %vm160_vm5 = vmor %vm155_vm4, %vm159_vm0 }
  0x98   : > { %vm162_vm6 = vmor %vm160_vm5, %vm161_vm3 }
  0x99   : > { %vm362_vm7 = vmpackc.low %vm162_vm6, %vm162_vm6 }
  0x9a   : > { %363 = vmatmul.msk.bf16.vlgmr.msra.gmra.mxu0 %vm362_vm7, %v484_v20 }
 0x117   : > { %v239_v21 = vpop.f32.mrf.mxu0 }
 0x118   : > { %vm243_vm8 = vcmp.gt.f32.partialorder %v239_v21, 0.0  ;;  %v244_v22 = vmul.f32 0.1, %v239_v21 }
 0x11a   : > { %v245_v23 = vsel %vm243_vm8, %v239_v21, %v244_v22 }
 0x11b   : > { %247 = vst.msk [vmem:[%s134_s29] sm:$0xff] %vm246_vm9, %v245_v23 }
 0x11c   : > { %446 = shalt.err (!%p443_p3)
}
 0x11d   : > { %376 = dma.vmem_to_hbm [thread:$0]  (%p538_p5), %s262_s30, 128, %s264_s3, %s249_s4  }
 0x11f   : > { %v241_v24 = vpop.f32.mrf.mxu0 }
 0x120 PF: > { %p382_p4 = scmp.ge.s32.totalorder %s481_s12, 2  ;;  %s275_s17 = sand.u32 1, %s469_s9  }
 0x121   : > { %s276_s21 = scalar_lea.sflag [#allocation3], %s275_s17 }
 0x122   : > { %p379_p7 = pnand %p382_p4, %p542_p6 }
 0x124   : > { %p380_p8 = pneg %p379_p7 }
 0x126   : > { %464 = dma.done.wait (%p380_p8), %s276_s21, 128  }
 0x127   : > { %466 = vsyncadd (%p380_p8), %s276_s21, 4294967168  ;;  %p12_p9 = scmp.ge.s32.totalorder %s525_s15, 4   ;;  %s614_s9 = smov %s473_s10 }
 0x128   : > { %s615_s10 = smov %s477_s11  ;;  %s616_s11 = smov %s536_s18 }
 0x129   : > { %s617_s12 = smov %s525_s15  ;;  %14 = sbr.rel (!%p12_p9) target bundleno = 3 (0x3), region = 63 }
 0x12e   :  { %282 = vsyncpa [#allocation3], 1 }
 0x12f   :  { %284 = vsyncpa [#allocation3 + $0x1], 1 }

</bundles_post_ra>
